<compile_context>
chip_gen: v6e
topology: v6e:2x2x1
jax: 0.10.0
libtpu: 0.0.40
codegen_flags: <defaults>
</compile_context>

<pallas_src>
import functools

import jax
import jax.numpy as jnp
from jax.experimental import pallas as pl
from jax.experimental.pallas import tpu as pltpu


# ----------------------------------------------------------------------------
# Fused linear projection kernel (torch.nn.Linear: y = x @ W^T + b)
# ----------------------------------------------------------------------------
def _linear_kernel(x_ref, w_ref, b_ref, o_ref):
    x = x_ref[...]                      # (tm, H_in)
    w = w_ref[...]                      # (H_out, H_in)  (torch convention)
    b = b_ref[...]                      # (1, H_out)
    y = jax.lax.dot_general(x, w, (((1,), (1,)), ((), ())),
                            preferred_element_type=jnp.float32)
    o_ref[...] = y + b


def _row_tile(n, max_tile=256):
    # tile must be a multiple of 8 or equal to the full dim
    return min(n, max_tile) if n % 8 == 0 else n


def pallas_linear(x, w, b):
    """x: (B, L, H_in), w: (H_out, H_in), b: (H_out,) -> (B, L, H_out)."""
    B, L, H_in = x.shape
    H_out = w.shape[0]
    M = B * L
    tm = _row_tile(M)
    out = pl.pallas_call(
        _linear_kernel,
        out_shape=jax.ShapeDtypeStruct((M, H_out), jnp.float32),
        grid=(pl.cdiv(M, tm),),
        in_specs=[
            pl.BlockSpec((tm, H_in), lambda i: (i, 0)),
            pl.BlockSpec((H_out, H_in), lambda i: (0, 0)),
            pl.BlockSpec((1, H_out), lambda i: (0, 0)),
        ],
        out_specs=pl.BlockSpec((tm, H_out), lambda i: (i, 0)),
        compiler_params=pltpu.CompilerParams(dimension_semantics=("parallel",)),
    )(x.reshape(M, H_in), w, b.reshape(1, H_out))
    return out.reshape(B, L, H_out)


# ----------------------------------------------------------------------------
# Time-aware attention kernel: one grid step per (batch, query-tile).
# All heads are processed per step (the head slicing is done in-kernel on the
# full-H blocks), so every HBM input is read exactly once.
# ----------------------------------------------------------------------------
def _attn_kernel(q_ref, k_ref, v_ref, tmk_ref, tmck_ref, tmv_ref, tmcv_ref,
                 mask_ref, o_ref, *, head_num, head_size):
    scale = 1.0 / (float(head_size) ** 0.5)
    q = q_ref[...] * scale              # pre-scale q: all logit terms are linear in q
    k = k_ref[...]                      # (L, H)   (already includes abs_pos_K)
    v = v_ref[...]                      # (L, H)   (already includes abs_pos_V)
    # exact by linearity: fold contextual + non-contextual relation tensors once
    tmk = tmk_ref[...] + tmck_ref[...]  # (tq, L, H)
    tmv = tmv_ref[...] + tmcv_ref[...]  # (tq, L, H)
    masked = mask_ref[...] != 0         # (tq, L), head-independent

    neg = jnp.float32(-2.0 ** 32 + 1)
    dims = (((1,), (1,)), ((), ()))     # contract last dims, no transpose copy
    outs = []
    for h in range(head_num):           # static unroll over heads
        sl = slice(h * head_size, (h + 1) * head_size)
        qh = q[:, sl]                   # (tq, d)
        kh = k[:, sl]                   # (L, d)
        vh = v[:, sl]                   # (L, d)

        # logits: (Q K^T + Q absPosK^T + (tmK + tmcK)·Q) / sqrt(d)
        aw = jax.lax.dot_general(qh, kh, dims, preferred_element_type=jnp.float32)
        aw = aw + jnp.sum(tmk[:, :, sl] * qh[:, None, :], axis=-1)

        # masking: where(mask, padding, aw)  (replacement, as in torch)
        aw = jnp.where(masked, neg, aw)

        # softmax over keys (max-shifted, matching torch behaviour incl. fully
        # masked rows -> uniform probabilities)
        aw = aw - jnp.max(aw, axis=-1, keepdims=True)
        e = jnp.exp(aw)
        p = e * pl.reciprocal(jnp.sum(e, axis=-1, keepdims=True), approx=True)
        # TODO(synk): dropout on attention probs skipped (eval-mode / identity).

        oh = jnp.dot(p, vh, preferred_element_type=jnp.float32)
        oh = oh + jnp.sum(p[:, :, None] * tmv[:, :, sl], axis=1)
        outs.append(oh)

    # heads concatenated along feature dim -> direct (B, L, H) layout, lane-dense
    o_ref[...] = jnp.concatenate(outs, axis=-1).astype(o_ref.dtype)


def pallas_time_aware_attention(q, k, v, tmk, tmck, tmv, tmcv, mask,
                                head_num, head_size, q_tile=None):
    B, L, H = q.shape
    tq = _row_tile(L, max_tile=64) if q_tile is None else q_tile
    grid = (B, pl.cdiv(L, tq))

    kern = functools.partial(_attn_kernel, head_num=head_num, head_size=head_size)
    seq_spec = pl.BlockSpec((None, tq, H), lambda b, qi: (b, qi, 0))
    kv_spec = pl.BlockSpec((None, L, H), lambda b, qi: (b, 0, 0))
    rel_spec = pl.BlockSpec((None, tq, L, H), lambda b, qi: (b, qi, 0, 0))
    mask_spec = pl.BlockSpec((None, tq, L), lambda b, qi: (b, qi, 0))

    return pl.pallas_call(
        kern,
        out_shape=jax.ShapeDtypeStruct((B, L, H), jnp.float32),
        grid=grid,
        in_specs=[seq_spec, kv_spec, kv_spec,
                  rel_spec, rel_spec, rel_spec, rel_spec,
                  mask_spec],
        out_specs=seq_spec,
        compiler_params=pltpu.CompilerParams(
            dimension_semantics=("parallel", "parallel"),
            vmem_limit_bytes=64 * 1024 * 1024),
    )(q, k, v, tmk, tmck, tmv, tmcv, mask)


# ----------------------------------------------------------------------------
# Wrapper: projections + mask combine + attention (no head-stack copies)
# ----------------------------------------------------------------------------
def time_aware_mha_cti(params, queries, keys, time_mask, attn_mask, same_time_mask,
                       time_matrix_K, time_matrix_V, abs_pos_K, abs_pos_V,
                       time_matrix_c_K, time_matrix_c_V, head_num):
    B, L, H = queries.shape
    d = H // head_num

    # Q projection; K and V projections fused into one kernel launch.
    Q = pallas_linear(queries, params["Qw"], params["Qb"])
    KVw = jnp.concatenate([params["Kw"], params["Vw"]], axis=0)   # (2H, H)
    KVb = jnp.concatenate([params["Kb"], params["Vb"]], axis=0)   # (2H,)
    KV = pallas_linear(keys, KVw, KVb)
    # fold absolute-position terms (exact: Q K^T + Q apK^T = Q (K+apK)^T, etc.)
    K = KV[..., :H] + abs_pos_K
    V = KV[..., H:] + abs_pos_V

    # single head-independent mask: where(any mask, padding, logits)
    mask = (time_mask.astype(bool)[:, :, None]
            | attn_mask.astype(bool)[None, :, :]
            | same_time_mask.astype(bool)).astype(jnp.int32)      # (B, L, L)

    return pallas_time_aware_attention(Q, K, V,
                                       time_matrix_K, time_matrix_c_K,
                                       time_matrix_V, time_matrix_c_V,
                                       mask, head_num, d)


# ----------------------------------------------------------------------------
# Pure-JAX reference (mirrors the torch module exactly) for verification only
# ----------------------------------------------------------------------------
def _head_stack3(x, h):
    B, L, H = x.shape
    d = H // h
    return x.reshape(B, L, h, d).transpose(2, 0, 1, 3).reshape(h * B, L, d)


def _head_stack4(x, h):
    B, L1, L2, H = x.shape
    d = H // h
    return x.reshape(B, L1, L2, h, d).transpose(3, 0, 1, 2, 4).reshape(h * B, L1, L2, d)


def _reference(params, queries, keys, time_mask, attn_mask, same_time_mask,
               tmK, tmV, apK, apV, tmcK, tmcV, head_num):
    B, L, H = queries.shape
    d = H // head_num
    HB = head_num * B
    hp = jax.lax.Precision.HIGHEST
    Q = jnp.einsum("blh,oh->blo", queries, params["Qw"], precision=hp) + params["Qb"]
    K = jnp.einsum("blh,oh->blo", keys, params["Kw"], precision=hp) + params["Kb"]
    V = jnp.einsum("blh,oh->blo", keys, params["Vw"], precision=hp) + params["Vb"]
    Q_, K_, V_ = (_head_stack3(x, head_num) for x in (Q, K, V))
    apK_, apV_ = _head_stack3(apK, head_num), _head_stack3(apV, head_num)
    tmK_, tmV_ = _head_stack4(tmK, head_num), _head_stack4(tmV, head_num)
    tmcK_, tmcV_ = _head_stack4(tmcK, head_num), _head_stack4(tmcV, head_num)

    aw = jnp.einsum("bid,bjd->bij", Q_, K_, precision=hp)
    aw += jnp.einsum("bid,bjd->bij", Q_, apK_, precision=hp)
    aw += jnp.einsum("bijd,bid->bij", tmK_, Q_, precision=hp)
    aw += jnp.einsum("bijd,bid->bij", tmcK_, Q_, precision=hp)
    aw = aw / (d ** 0.5)

    neg = jnp.float32(-2.0 ** 32 + 1)
    tm = jnp.broadcast_to(jnp.tile(time_mask, (head_num, 1))[:, :, None], (HB, L, L))
    am = jnp.broadcast_to(attn_mask[None], (HB, L, L))
    sm = jnp.tile(same_time_mask, (head_num, 1, 1))
    aw = jnp.where(tm, neg, aw)
    aw = jnp.where(am, neg, aw)
    aw = jnp.where(sm, neg, aw)
    p = jax.nn.softmax(aw, axis=-1)

    out = jnp.einsum("bij,bjd->bid", p, V_, precision=hp)
    out += jnp.einsum("bij,bjd->bid", p, apV_, precision=hp)
    out += jnp.einsum("bij,bijd->bid", p, tmV_, precision=hp)
    out += jnp.einsum("bij,bijd->bid", p, tmcV_, precision=hp)
    return out.reshape(head_num, B, L, d).transpose(1, 2, 0, 3).reshape(B, L, H)


if __name__ == "__main__":
    B, L, H, heads = 2, 8, 32, 4
    d = H // heads
    key = jax.random.PRNGKey(0)
    ks = jax.random.split(key, 16)

    bound = 1.0 / (H ** 0.5)  # torch.nn.Linear default init range
    params = {
        "Qw": jax.random.uniform(ks[0], (H, H), jnp.float32, -bound, bound),
        "Qb": jax.random.uniform(ks[1], (H,), jnp.float32, -bound, bound),
        "Kw": jax.random.uniform(ks[2], (H, H), jnp.float32, -bound, bound),
        "Kb": jax.random.uniform(ks[3], (H,), jnp.float32, -bound, bound),
        "Vw": jax.random.uniform(ks[4], (H, H), jnp.float32, -bound, bound),
        "Vb": jax.random.uniform(ks[5], (H,), jnp.float32, -bound, bound),
    }

    queries = jax.random.normal(ks[6], (B, L, H), jnp.float32)
    keys_in = jax.random.normal(ks[7], (B, L, H), jnp.float32)
    time_matrix_K = jax.random.normal(ks[8], (B, L, L, H), jnp.float32) * 0.1
    time_matrix_V = jax.random.normal(ks[9], (B, L, L, H), jnp.float32) * 0.1
    abs_pos_K = jax.random.normal(ks[10], (B, L, H), jnp.float32) * 0.1
    abs_pos_V = jax.random.normal(ks[11], (B, L, H), jnp.float32) * 0.1
    time_matrix_c_K = jax.random.normal(ks[12], (B, L, L, H), jnp.float32) * 0.1
    time_matrix_c_V = jax.random.normal(ks[13], (B, L, L, H), jnp.float32) * 0.1

    time_mask = jax.random.bernoulli(ks[14], 0.2, (B, L))          # padded positions
    attn_mask = jnp.triu(jnp.ones((L, L), dtype=bool), k=1)        # mask future (causal)
    same_time_mask = jax.random.bernoulli(ks[15], 0.1, (B, L, L))

    out = time_aware_mha_cti(params, queries, keys_in, time_mask, attn_mask,
                             same_time_mask, time_matrix_K, time_matrix_V,
                             abs_pos_K, abs_pos_V, time_matrix_c_K,
                             time_matrix_c_V, heads)
    out = jax.block_until_ready(out)
    assert out.shape == (B, L, H) and out.dtype == jnp.float32

    ref = _reference(params, queries, keys_in, time_mask, attn_mask,
                     same_time_mask, time_matrix_K, time_matrix_V,
                     abs_pos_K, abs_pos_V, time_matrix_c_K, time_matrix_c_V, heads)
    assert jnp.allclose(out, ref, rtol=1e-2, atol=1e-2), \
        f"max abs err {jnp.max(jnp.abs(out - ref))}"

    print("KERNEL_OK")
</pallas_src>

<mosaic_0001>
module attributes {stable_mosaic.version = 11 : i64} {
  func.func @_linear_kernel(%arg0: i32, %arg1: memref<16x32xf32, #tpu.memory_space<vmem>>, %arg2: memref<32x32xf32, #tpu.memory_space<vmem>>, %arg3: memref<1x32xf32, #tpu.memory_space<vmem>>, %arg4: memref<16x32xf32, #tpu.memory_space<vmem>>) attributes {dimension_semantics = [#tpu.dimension_semantics<parallel>], iteration_bounds = array<i64: 1>, scalar_prefetch = 0 : i64, scratch_operands = 0 : i64, tpu.core_type = #tpu.core_type<tc>, window_params = [{transform_indices = @transform_0, window_bounds = array<i64: 16, 32>}, {pipeline_mode = #tpu.pipeline_mode<synchronous>, transform_indices = @transform_1, window_bounds = array<i64: 32, 32>}, {pipeline_mode = #tpu.pipeline_mode<synchronous>, transform_indices = @transform_2, window_bounds = array<i64: 1, 32>}, {transform_indices = @transform_3, window_bounds = array<i64: 16, 32>}]} {
    %c0 = arith.constant 0 : index
    %c0_0 = arith.constant 0 : index
    %0 = vector.load %arg1[%c0, %c0_0] : memref<16x32xf32, #tpu.memory_space<vmem>>, vector<16x32xf32>
    %c0_1 = arith.constant 0 : index
    %c0_2 = arith.constant 0 : index
    %1 = vector.load %arg2[%c0_1, %c0_2] : memref<32x32xf32, #tpu.memory_space<vmem>>, vector<32x32xf32>
    %c0_3 = arith.constant 0 : index
    %c0_4 = arith.constant 0 : index
    %2 = vector.load %arg3[%c0_3, %c0_4] : memref<1x32xf32, #tpu.memory_space<vmem>>, vector<1x32xf32>
    %cst = arith.constant dense<0.000000e+00> : vector<16x32xf32>
    %3 = tpu.matmul %0, %1, %cst {dimension_numbers = #tpu.dot_dimension_numbers<[1], [1], [0], [0], [0, 0, 1, 0], [], []>} : vector<16x32xf32>, vector<32x32xf32>, vector<16x32xf32> -> vector<16x32xf32>
    %4 = vector.broadcast %2 : vector<1x32xf32> to vector<16x32xf32>
    %5 = arith.addf %3, %4 : vector<16x32xf32>
    %c0_5 = arith.constant 0 : index
    %c0_6 = arith.constant 0 : index
    %6 = vector.load %arg4[%c0_5, %c0_6] : memref<16x32xf32, #tpu.memory_space<vmem>>, vector<16x32xf32>
    tpu.vector_store %arg4[%c0_5, %c0_6], %5 {strides = array<i32>} : memref<16x32xf32, #tpu.memory_space<vmem>>, vector<16x32xf32>,
    return
  }
  func.func @transform_0(%arg0: i32) -> (i32, i32) {
    %c0_i32 = arith.constant 0 : i32
    %c0_i32_0 = arith.constant 0 : i32
    return %arg0, %c0_i32 : i32, i32
  }
  func.func @transform_1(%arg0: i32) -> (i32, i32) {
    %c0_i32 = arith.constant 0 : i32
    %c0_i32_0 = arith.constant 0 : i32
    %c0_i32_1 = arith.constant 0 : i32
    return %c0_i32, %c0_i32_0 : i32, i32
  }
  func.func @transform_2(%arg0: i32) -> (i32, i32) {
    %c0_i32 = arith.constant 0 : i32
    %c0_i32_0 = arith.constant 0 : i32
    %c0_i32_1 = arith.constant 0 : i32
    return %c0_i32, %c0_i32_0 : i32, i32
  }
  func.func @transform_3(%arg0: i32) -> (i32, i32) {
    %c0_i32 = arith.constant 0 : i32
    %c0_i32_0 = arith.constant 0 : i32
    return %arg0, %c0_i32 : i32, i32
  }
}

</mosaic_0001>

<bundles_post_ra>
// kernel: tpu_custom_call.1
= control target key start
LH: loop header
LB: loop body
LE: loop exit
PB: predicated region body
PF: predicated region fallthrough
CT: control target
= control target key end

     0   :  { %8 = vsyncpa [#allocation3], 0  ;;  %s323_s0 = inlined_call_operand.hbm [shape: f32[16,32], index: 0, kind: input, shape index: {}]   ;;  %s324_s1 = inlined_call_operand.hbm [shape: f32[32,32], index: 1, kind: input, shape index: {}]   ;;  %s325_s2 = inlined_call_operand.vmem [shape: f32[1,32], index: 2, kind: input, shape index: {}]   ;;  %s326_s3 = inlined_call_operand.hbm [shape: f32[16,32], index: 3, kind: output, shape index: {}]  }
   0x1   :  { %9 = vsyncpa [#allocation6], 0 }
   0x2   :  { %10 = vsyncpa [#allocation4], 0  ;;  %s265_s12 = smov [#allocation2]  }
   0x3   :  { %s16_s13 = sshll.u32 %s265_s12, 4  ;;  %s17_s13 = int_to_ptr.vmem [resolvable:$true] %s16_s13 }
   0x4   :  { %s207_s14 = scalar_lea.vmem %s17_s13, 256  ;;  %p212_p1 = scmp.lt.s32.totalorder %s17_s13, %s17_s13 }
   0x5   :  { %p208_p0 = scmp.ne.s32.totalorder %s17_s13, %s207_s14  ;;  %p213_p2 = scmp.lt.s32.totalorder %s207_s14, %s207_s14 }
   0x7   :  { %p214_p3 = por %p213_p2, %p212_p1 }
   0x9   :  { %p215_p4 = pnand %p214_p3, %p208_p0 }
   0xb   :  { %218 = shalt.err (!%p215_p4)
}
   0xc   :  { %s266_s15 = smov 128   ;;  %s267_s16 = smov 8  }
   0xd   :  { %22 = dma.hbm_to_vmem [thread:$0]  %s323_s0, 256, %s17_s13, [#allocation3], %s266_s15, %s266_s15, %s267_s16  }
   0xe   :  { %s268_s19 = smov [#allocation5]  }
   0xf   :  { %s28_s20 = sshll.u32 %s268_s19, 4  ;;  %s29_s20 = int_to_ptr.vmem [resolvable:$true] %s28_s20 }
  0x10   :  { %s227_s21 = scalar_lea.vmem %s29_s20, 512  ;;  %p232_p6 = scmp.lt.s32.totalorder %s29_s20, %s29_s20 }
  0x11   :  { %p228_p5 = scmp.ne.s32.totalorder %s29_s20, %s227_s21  ;;  %p233_p7 = scmp.lt.s32.totalorder %s227_s21, %s227_s21 }
  0x13   :  { %p234_p8 = por %p233_p7, %p232_p6 }
  0x15   :  { %p235_p9 = pnand %p234_p8, %p228_p5 }
  0x17   :  { %238 = shalt.err (!%p235_p9)
}
  0x18   :  { %34 = dma.hbm_to_vmem [thread:$0]  %s324_s1, 512, %s29_s20, [#allocation6], %s266_s15, %s266_s15, %s267_s16  }
  0x19   :  { %259 = dma.done.wait [#allocation3], 256  }
  0x1a   :  { %260 = vsyncadd [#allocation3], 4294967040 }
  0x1b   :  { %261 = dma.done.wait [#allocation6], 512  }
  0x1c   :  { %262 = vsyncadd [#allocation6], 4294966784  ;;  %vm56_vm0 = vcmask 261120   ;;  %v48_v0 = vld [vmem:[#allocation5 + $0x18] sm:$0xff]  ;;  %v47_v1 = vld [vmem:[#allocation5 + $0x10] sm:$0xff]  ;;  %s269_s24 = smov [#allocation7]  }
  0x1d   :  { %183 = vmatprep.subr.msk.mxu0 %vm56_vm0, %v48_v0  ;;  %v43_v2 = vld [vmem:[#allocation2] sm:$0xff]  ;;  %v46_v3 = vld [vmem:[#allocation5 + $0x8] sm:$0xff]  ;;  %v45_v4 = vld [vmem:[#allocation5] sm:$0xff]  ;;  %s157_s25 = sshll.u32 %s269_s24, 4  ;;  %s158_s25 = int_to_ptr.vmem [resolvable:$true] %s157_s25 }
  0x1e   :  { %184 = vmatpush3.xpose.msk.msra.mxu0 %vm56_vm0, %v48_v0  ;;  %191 = vmatprep.mubr.msk.f32.mxu0 %vm56_vm0, %v43_v2  ;;  %v44_v5 = vld [vmem:[#allocation2 + $0x8] sm:$0xff]  ;;  %v170_v6 = vld [vmem:[%s325_s2] ss:$0 sm:$0xff]  ;;  %s239_s26 = scalar_lea.vmem %s158_s25, 256  ;;  %p244_p11 = scmp.lt.s32.totalorder %s158_s25, %s158_s25 }
  0x1f   :  { %185 = vmatprep.subr.msk.mxu0 %vm56_vm0, %v47_v1  ;;  %p240_p10 = scmp.ne.s32.totalorder %s158_s25, %s239_s26  ;;  %p245_p12 = scmp.lt.s32.totalorder %s239_s26, %s239_s26 }
  0x21   :  { %p246_p13 = por %p245_p12, %p244_p11 }
  0x22   :  { %186 = vmatpush3.xpose.msk.msra.mxu0 %vm56_vm0, %v47_v1 }
  0x23   :  { %187 = vmatprep.subr.msk.mxu0 %vm56_vm0, %v46_v3  ;;  %p247_p0 = pnand %p246_p13, %p240_p10 }
  0x26   :  { %188 = vmatpush3.xpose.msk.msra.mxu0 %vm56_vm0, %v46_v3 }
  0x27   :  { %189 = vmatprep.subr.msk.mxu0 %vm56_vm0, %v45_v4 }
  0x2a   :  { %190 = vmatpush3.xpose.msk.msra.mxu0 %vm56_vm0, %v45_v4 }
  0x2d   :  { %192 = vmatmul.mubr.msk.f32.vlgmr.msra.gmra.mxu0 %vm56_vm0, %v44_v5 }
  0xed   :  { %v193_v7 = vpop.f32.mrf.mxu0 }
  0xee   :  { %v147_v8 = vadd.f32 %v193_v7, %v170_v6 }
  0xef   :  { %v141_v9 = vpop.f32.mrf.mxu0 }
  0xf0   :  { %151 = vst.msk [vmem:[#allocation7 + $0x8] sm:$0xff] %vm56_vm0, %v147_v8  ;;  %v142_v10 = vadd.f32 %v170_v6, %v141_v9 }
  0xf2   :  { %150 = vst.msk [vmem:[#allocation7] sm:$0xff] %vm56_vm0, %v142_v10 }
  0xf3   :  { %250 = shalt.err (!%p247_p0)
}
  0xf4   :  { %163 = dma.vmem_to_hbm [thread:$0]  %s158_s25, 256, %s326_s3, [#allocation4], %s266_s15, %s266_s15, %s267_s16  }
  0xf5   :  { %263 = dma.done.wait [#allocation4], 256  }
  0xf6   :  { %264 = vsyncadd [#allocation4], 4294967040 }
  0xf7   :  { %167 = vsyncpa [#allocation3], 1 }
  0xf8   :  { %168 = vsyncpa [#allocation6], 1 }
  0xf9   :  { %169 = vsyncpa [#allocation4], 1 }

</bundles_post_ra>
